<compile_context>
chip_gen: v7x
topology: tpu7x:2x2x1
jax: 0.10.0
libtpu: 0.0.40
codegen_flags: <defaults>
</compile_context>

<pallas_src>
import functools
import math

import jax
import jax.numpy as jnp
from jax import lax
from jax.experimental import pallas as pl
from jax.experimental.pallas import tpu as pltpu


# ----------------------------------------------------------------------------
# Fused kernel: one grid step = one tile of Bt batch elements.
# ----------------------------------------------------------------------------
def _fused_mha_res_ln_kernel(
    q_in_ref,    # [Bt, q_n, d_model]   f32
    k_in_ref,    # [Bt, k_n, d_model]   f32
    v_in_ref,    # [Bt, k_n, d_model]   f32
    wq_ref,      # [d_model, H*d_k]     bf16 (pre-scaled by 1/sqrt(d_k))
    wk_ref,      # [d_model, H*d_k]     bf16
    wv_ref,      # [d_model, H*d_v]     bf16
    wfc_ref,     # [H*d_v, d_model]     bf16
    gamma_ref,   # [1, d_model]         f32
    beta_ref,    # [1, d_model]         f32
    out_ref,     # [Bt, q_n, d_model]   f32
    *maybe_attn_ref,   # optionally ([Bt, H, q_n, k_n] f32,)
    n_heads,
    d_k,
    d_v,
    eps,
    emit_attn,
):
    f32 = jnp.float32
    bf16 = jnp.bfloat16

    bt, q_n, d_model = q_in_ref.shape
    k_n = k_in_ref.shape[1]

    xq = q_in_ref[...]                                          # [Bt, q_n, D] f32
    xq2 = xq.reshape(bt * q_n, d_model).astype(bf16)            # [Bt*q_n, D]
    xk2 = k_in_ref[...].reshape(bt * k_n, d_model).astype(bf16)
    xv2 = v_in_ref[...].reshape(bt * k_n, d_model).astype(bf16)

    # Input projections for all heads at once (bf16 MXU, f32 accumulation).
    # The 1/sqrt(d_k) scale is already folded into wq on the host.
    Q = jnp.dot(xq2, wq_ref[...], preferred_element_type=f32)   # [Bt*q_n, H*d_k]
    K = jnp.dot(xk2, wk_ref[...], preferred_element_type=f32)   # [Bt*k_n, H*d_k]
    V = jnp.dot(xv2, wv_ref[...], preferred_element_type=f32)   # [Bt*k_n, H*d_v]

    Q3 = Q.reshape(bt, q_n, n_heads * d_k).astype(bf16)
    K3 = K.reshape(bt, k_n, n_heads * d_k).astype(bf16)
    V3 = V.reshape(bt, k_n, n_heads * d_v).astype(bf16)

    # Per-head attention, batched over the Bt batch elements in each matmul.
    ctx_parts = []
    for h in range(n_heads):
        qh = Q3[:, :, h * d_k:(h + 1) * d_k]                    # [Bt, q_n, d_k]
        kh = K3[:, :, h * d_k:(h + 1) * d_k]                    # [Bt, k_n, d_k]
        vh = V3[:, :, h * d_v:(h + 1) * d_v]                    # [Bt, k_n, d_v]

        # scores = (q / sqrt(d_k)) @ k^T  ->  [Bt, q_n, k_n]  (f32 accumulation)
        s = jnp.einsum("bqd,bkd->bqk", qh, kh, preferred_element_type=f32)

        # Numerically stable softmax in f32.  Exact divide so stored attention
        # rows sum to 1.
        m = jnp.max(s, axis=-1, keepdims=True)
        e = jnp.exp(s - m)
        denom = jnp.sum(e, axis=-1, keepdims=True)
        p = e / denom                                           # [Bt, q_n, k_n] f32

        if emit_attn:
            maybe_attn_ref[0][:, h, :, :] = p

        # Per-head context, kept for a single fused fc matmul afterwards.
        ctx_parts.append(
            jnp.einsum("bqk,bkd->bqd", p.astype(bf16), vh,
                       preferred_element_type=f32))             # [Bt, q_n, d_v]

    # One fc contraction over the full H*d_v axis.
    ctx = jnp.concatenate(ctx_parts, axis=-1)                   # [Bt, q_n, H*d_v] f32
    ctx2 = ctx.reshape(bt * q_n, n_heads * d_v).astype(bf16)
    mha = jnp.dot(ctx2, wfc_ref[...], preferred_element_type=f32)  # [Bt*q_n, D]

    # Residual add + LayerNorm (biased variance, eps inside sqrt — PyTorch).
    y = mha.reshape(bt, q_n, d_model) + xq                      # f32
    mu = jnp.mean(y, axis=-1, keepdims=True)
    var = jnp.mean(jnp.square(y - mu), axis=-1, keepdims=True)
    y_norm = (y - mu) * lax.rsqrt(var + eps)
    out_ref[...] = y_norm * gamma_ref[...] + beta_ref[...]


# ----------------------------------------------------------------------------
# Module wrapper (parameter container + forward).
# ----------------------------------------------------------------------------
class MultiHeadAttentionResLNPallas:
    def __init__(self, d_model, n_heads, d_k, d_v, key, eps=1e-5):
        self.d_model = d_model
        self.n_heads = n_heads
        self.d_k = d_k
        self.d_v = d_v
        self.eps = float(eps)

        k1, k2, k3, k4, k5, k6 = jax.random.split(key, 6)
        # PyTorch nn.Linear(in, out, bias=False): y = x @ W.T; we store W.T.
        s = 1.0 / math.sqrt(d_model)
        self.Wq = jax.random.normal(k1, (d_model, d_k * n_heads), jnp.float32) * s
        self.Wk = jax.random.normal(k2, (d_model, d_k * n_heads), jnp.float32) * s
        self.Wv = jax.random.normal(k3, (d_model, d_v * n_heads), jnp.float32) * s
        sf = 1.0 / math.sqrt(n_heads * d_v)
        self.Wfc = jax.random.normal(k4, (n_heads * d_v, d_model), jnp.float32) * sf
        # LayerNorm affine params (randomized so the test exercises them).
        self.gamma = 1.0 + 0.1 * jax.random.normal(k5, (d_model,), jnp.float32)
        self.beta = 0.1 * jax.random.normal(k6, (d_model,), jnp.float32)

        # Kernel-side weights: bf16 (half the DMA / VMEM bytes), scale folded
        # into Wq so the kernel never multiplies by 1/sqrt(d_k).
        scale = 1.0 / math.sqrt(d_k)
        self._wq_bf16 = (self.Wq * scale).astype(jnp.bfloat16)
        self._wk_bf16 = self.Wk.astype(jnp.bfloat16)
        self._wv_bf16 = self.Wv.astype(jnp.bfloat16)
        self._wfc_bf16 = self.Wfc.astype(jnp.bfloat16)

    def __call__(self, inputs_Q, inputs_K, inputs_V, return_attn=True):
        B, q_n, d_model = inputs_Q.shape
        k_n = inputs_K.shape[1]
        H, dk, dv = self.n_heads, self.d_k, self.d_v
        assert d_model == self.d_model
        assert inputs_V.shape[1] == k_n

        # Batch-tile size: aim for ~128 MXU rows per projection matmul, while
        # keeping Bt a divisor of B.
        bt = min(B, max(1, 128 // max(q_n, 1)))
        while B % bt != 0:
            bt -= 1
        grid = (B // bt,)

        kernel = functools.partial(
            _fused_mha_res_ln_kernel,
            n_heads=H, d_k=dk, d_v=dv, eps=self.eps, emit_attn=return_attn,
        )

        in_specs = [
            # Per-grid-step activation tiles (Bt batch elements at a time).
            pl.BlockSpec((bt, q_n, d_model), lambda b: (b, 0, 0)),
            pl.BlockSpec((bt, k_n, d_model), lambda b: (b, 0, 0)),
            pl.BlockSpec((bt, k_n, d_model), lambda b: (b, 0, 0)),
            # Weights / LN params: full arrays, VMEM-resident across all steps.
            pl.BlockSpec((d_model, H * dk), lambda b: (0, 0)),
            pl.BlockSpec((d_model, H * dk), lambda b: (0, 0)),
            pl.BlockSpec((d_model, H * dv), lambda b: (0, 0)),
            pl.BlockSpec((H * dv, d_model), lambda b: (0, 0)),
            pl.BlockSpec((1, d_model), lambda b: (0, 0)),
            pl.BlockSpec((1, d_model), lambda b: (0, 0)),
        ]

        out_shape = [jax.ShapeDtypeStruct((B, q_n, d_model), jnp.float32)]
        out_specs = [pl.BlockSpec((bt, q_n, d_model), lambda b: (b, 0, 0))]
        if return_attn:
            out_shape.append(jax.ShapeDtypeStruct((B, H, q_n, k_n), jnp.float32))
            out_specs.append(
                pl.BlockSpec((bt, H, q_n, k_n), lambda b: (b, 0, 0, 0)))

        results = pl.pallas_call(
            kernel,
            out_shape=tuple(out_shape),
            grid=grid,
            in_specs=in_specs,
            out_specs=tuple(out_specs),
            compiler_params=pltpu.CompilerParams(
                dimension_semantics=("parallel",)),
        )(inputs_Q, inputs_K, inputs_V,
          self._wq_bf16, self._wk_bf16, self._wv_bf16, self._wfc_bf16,
          self.gamma.reshape(1, d_model), self.beta.reshape(1, d_model))

        if return_attn:
            return results[0], results[1]
        return results[0], None


# ----------------------------------------------------------------------------
# Pure-JAX f32 reference (mirrors the PyTorch MultiHeadAttention_Res_LN).
# ----------------------------------------------------------------------------
def reference_forward(m, inputs_Q, inputs_K, inputs_V):
    B, q_n, d_model = inputs_Q.shape
    k_n = inputs_K.shape[1]
    H, dk, dv = m.n_heads, m.d_k, m.d_v
    Q = (inputs_Q @ m.Wq).reshape(B, q_n, H, dk).transpose(0, 2, 1, 3)
    K = (inputs_K @ m.Wk).reshape(B, k_n, H, dk).transpose(0, 2, 1, 3)
    V = (inputs_V @ m.Wv).reshape(B, k_n, H, dv).transpose(0, 2, 1, 3)
    scores = jnp.einsum("bhqd,bhkd->bhqk", Q, K) / jnp.sqrt(jnp.float32(dk))
    attn = jax.nn.softmax(scores, axis=-1)
    ctx = jnp.einsum("bhqk,bhkd->bhqd", attn, V)
    ctx = ctx.transpose(0, 2, 1, 3).reshape(B, q_n, H * dv)
    mha = ctx @ m.Wfc
    y = mha + inputs_Q
    mu = jnp.mean(y, axis=-1, keepdims=True)
    var = jnp.mean(jnp.square(y - mu), axis=-1, keepdims=True)
    out = (y - mu) / jnp.sqrt(var + m.eps) * m.gamma + m.beta
    return out, attn


if __name__ == "__main__":
    # Small shapes consistent with the module's forward pass.
    B, q_n, k_n = 2, 8, 8
    d_model, n_heads, d_k, d_v = 32, 4, 8, 8

    key = jax.random.PRNGKey(0)
    kq, kk, kv, kparam = jax.random.split(key, 4)
    inputs_Q = jax.random.normal(kq, (B, q_n, d_model), jnp.float32)
    inputs_K = jax.random.normal(kk, (B, k_n, d_model), jnp.float32)
    inputs_V = jax.random.normal(kv, (B, k_n, d_model), jnp.float32)

    mha = MultiHeadAttentionResLNPallas(d_model, n_heads, d_k, d_v, kparam)

    outputs, attn = mha(inputs_Q, inputs_K, inputs_V)
    jax.block_until_ready((outputs, attn))

    ref_out, ref_attn = reference_forward(mha, inputs_Q, inputs_K, inputs_V)
    assert outputs.shape == (B, q_n, d_model)
    assert attn.shape == (B, n_heads, q_n, k_n)
    # Tolerances account for bf16 MXU operands (f32 accumulation) vs the pure
    # f32 reference.
    assert jnp.allclose(outputs, ref_out, atol=3e-2, rtol=3e-2), (
        float(jnp.max(jnp.abs(outputs - ref_out))))
    assert jnp.allclose(attn, ref_attn, atol=2e-2, rtol=2e-2), (
        float(jnp.max(jnp.abs(attn - ref_attn))))
    # Stored attention uses an exact divide: rows sum to 1.
    assert jnp.allclose(jnp.sum(attn, axis=-1), 1.0, atol=1e-5)

    # Exercise the attn-less fast path as well.
    out_only, none_attn = mha(inputs_Q, inputs_K, inputs_V, return_attn=False)
    jax.block_until_ready(out_only)
    assert none_attn is None
    assert jnp.allclose(out_only, ref_out, atol=3e-2, rtol=3e-2)

    print("KERNEL_OK")
</pallas_src>

<mosaic_0001>
module attributes {stable_mosaic.version = 11 : i64} {
  func.func @_fused_mha_res_ln_kernel(%arg0: i32, %arg1: memref<2x8x32xf32, #tpu.memory_space<vmem>>, %arg2: memref<2x8x32xf32, #tpu.memory_space<vmem>>, %arg3: memref<2x8x32xf32, #tpu.memory_space<vmem>>, %arg4: memref<32x32xbf16, #tpu.memory_space<vmem>>, %arg5: memref<32x32xbf16, #tpu.memory_space<vmem>>, %arg6: memref<32x32xbf16, #tpu.memory_space<vmem>>, %arg7: memref<32x32xbf16, #tpu.memory_space<vmem>>, %arg8: memref<1x32xf32, #tpu.memory_space<vmem>>, %arg9: memref<1x32xf32, #tpu.memory_space<vmem>>, %arg10: memref<2x8x32xf32, #tpu.memory_space<vmem>>, %arg11: memref<2x4x8x8xf32, #tpu.memory_space<vmem>>) attributes {dimension_semantics = [#tpu.dimension_semantics<parallel>], iteration_bounds = array<i64: 1>, scalar_prefetch = 0 : i64, scratch_operands = 0 : i64, tpu.core_type = #tpu.core_type<tc>, window_params = [{transform_indices = @transform_0, window_bounds = array<i64: 2, 8, 32>}, {transform_indices = @transform_1, window_bounds = array<i64: 2, 8, 32>}, {transform_indices = @transform_2, window_bounds = array<i64: 2, 8, 32>}, {pipeline_mode = #tpu.pipeline_mode<synchronous>, transform_indices = @transform_3, window_bounds = array<i64: 32, 32>}, {pipeline_mode = #tpu.pipeline_mode<synchronous>, transform_indices = @transform_4, window_bounds = array<i64: 32, 32>}, {pipeline_mode = #tpu.pipeline_mode<synchronous>, transform_indices = @transform_5, window_bounds = array<i64: 32, 32>}, {pipeline_mode = #tpu.pipeline_mode<synchronous>, transform_indices = @transform_6, window_bounds = array<i64: 32, 32>}, {pipeline_mode = #tpu.pipeline_mode<synchronous>, transform_indices = @transform_7, window_bounds = array<i64: 1, 32>}, {pipeline_mode = #tpu.pipeline_mode<synchronous>, transform_indices = @transform_8, window_bounds = array<i64: 1, 32>}, {transform_indices = @transform_9, window_bounds = array<i64: 2, 8, 32>}, {transform_indices = @transform_10, window_bounds = array<i64: 2, 4, 8, 8>}]} {
    %c0 = arith.constant 0 : index
    %c0_0 = arith.constant 0 : index
    %c0_1 = arith.constant 0 : index
    %0 = vector.load %arg1[%c0, %c0_0, %c0_1] : memref<2x8x32xf32, #tpu.memory_space<vmem>>, vector<2x8x32xf32>
    %1 = vector.shape_cast %0 : vector<2x8x32xf32> to vector<16x32xf32>
    %2 = arith.truncf %1 : vector<16x32xf32> to vector<16x32xbf16>
    %c0_2 = arith.constant 0 : index
    %c0_3 = arith.constant 0 : index
    %c0_4 = arith.constant 0 : index
    %3 = vector.load %arg2[%c0_2, %c0_3, %c0_4] : memref<2x8x32xf32, #tpu.memory_space<vmem>>, vector<2x8x32xf32>
    %4 = vector.shape_cast %3 : vector<2x8x32xf32> to vector<16x32xf32>
    %5 = arith.truncf %4 : vector<16x32xf32> to vector<16x32xbf16>
    %c0_5 = arith.constant 0 : index
    %c0_6 = arith.constant 0 : index
    %c0_7 = arith.constant 0 : index
    %6 = vector.load %arg3[%c0_5, %c0_6, %c0_7] : memref<2x8x32xf32, #tpu.memory_space<vmem>>, vector<2x8x32xf32>
    %7 = vector.shape_cast %6 : vector<2x8x32xf32> to vector<16x32xf32>
    %8 = arith.truncf %7 : vector<16x32xf32> to vector<16x32xbf16>
    %c0_8 = arith.constant 0 : index
    %c0_9 = arith.constant 0 : index
    %9 = vector.load %arg4[%c0_8, %c0_9] : memref<32x32xbf16, #tpu.memory_space<vmem>>, vector<32x32xbf16>
    %cst = arith.constant dense<0.000000e+00> : vector<16x32xf32>
    %10 = tpu.matmul %2, %9, %cst {dimension_numbers = #tpu.dot_dimension_numbers<[1], [0], [0], [1], [0, 0, 1, 1], [], []>} : vector<16x32xbf16>, vector<32x32xbf16>, vector<16x32xf32> -> vector<16x32xf32>
    %c0_10 = arith.constant 0 : index
    %c0_11 = arith.constant 0 : index
    %11 = vector.load %arg5[%c0_10, %c0_11] : memref<32x32xbf16, #tpu.memory_space<vmem>>, vector<32x32xbf16>
    %cst_12 = arith.constant dense<0.000000e+00> : vector<16x32xf32>
    %12 = tpu.matmul %5, %11, %cst_12 {dimension_numbers = #tpu.dot_dimension_numbers<[1], [0], [0], [1], [0, 0, 1, 1], [], []>} : vector<16x32xbf16>, vector<32x32xbf16>, vector<16x32xf32> -> vector<16x32xf32>
    %c0_13 = arith.constant 0 : index
    %c0_14 = arith.constant 0 : index
    %13 = vector.load %arg6[%c0_13, %c0_14] : memref<32x32xbf16, #tpu.memory_space<vmem>>, vector<32x32xbf16>
    %cst_15 = arith.constant dense<0.000000e+00> : vector<16x32xf32>
    %14 = tpu.matmul %8, %13, %cst_15 {dimension_numbers = #tpu.dot_dimension_numbers<[1], [0], [0], [1], [0, 0, 1, 1], [], []>} : vector<16x32xbf16>, vector<32x32xbf16>, vector<16x32xf32> -> vector<16x32xf32>
    %15 = vector.shape_cast %10 : vector<16x32xf32> to vector<2x8x32xf32>
    %16 = arith.truncf %15 : vector<2x8x32xf32> to vector<2x8x32xbf16>
    %17 = vector.shape_cast %12 : vector<16x32xf32> to vector<2x8x32xf32>
    %18 = arith.truncf %17 : vector<2x8x32xf32> to vector<2x8x32xbf16>
    %19 = vector.shape_cast %14 : vector<16x32xf32> to vector<2x8x32xf32>
    %20 = arith.truncf %19 : vector<2x8x32xf32> to vector<2x8x32xbf16>
    %21 = vector.extract_strided_slice %16 {offsets = [0, 0, 0], sizes = [2, 8, 8], strides = [1, 1, 1]} : vector<2x8x32xbf16> to vector<2x8x8xbf16>
    %22 = vector.extract_strided_slice %18 {offsets = [0, 0, 0], sizes = [2, 8, 8], strides = [1, 1, 1]} : vector<2x8x32xbf16> to vector<2x8x8xbf16>
    %23 = vector.extract_strided_slice %20 {offsets = [0, 0, 0], sizes = [2, 8, 8], strides = [1, 1, 1]} : vector<2x8x32xbf16> to vector<2x8x8xbf16>
    "tpu.trace_start"() <{level = 10 : i32, message = "bqd,bkd->bqk"}> : () -> ()
    %cst_16 = arith.constant dense<0.000000e+00> : vector<2x8x8xf32>
    %24 = tpu.matmul %21, %22, %cst_16 {dimension_numbers = #tpu.dot_dimension_numbers<[2], [2], [1], [1], [0, 0, 0, 1, 1, 1], [0], [0]>} : vector<2x8x8xbf16>, vector<2x8x8xbf16>, vector<2x8x8xf32> -> vector<2x8x8xf32>
    "tpu.trace_stop"() : () -> ()
    %cst_17 = arith.constant dense<0xFF800000> : vector<2x8xf32>
    %25 = vector.multi_reduction <maximumf>, %24, %cst_17 [2] : vector<2x8x8xf32> to vector<2x8xf32>
    %26 = vector.shape_cast %25 : vector<2x8xf32> to vector<2x8x1xf32>
    %27 = vector.broadcast %26 : vector<2x8x1xf32> to vector<2x8x8xf32>
    %28 = arith.subf %24, %27 : vector<2x8x8xf32>
    %29 = math.exp %28 : vector<2x8x8xf32>
    %cst_18 = arith.constant dense<0.000000e+00> : vector<2x8xf32>
    %30 = vector.multi_reduction <add>, %29, %cst_18 [2] : vector<2x8x8xf32> to vector<2x8xf32>
    %31 = vector.shape_cast %30 : vector<2x8xf32> to vector<2x8x1xf32>
    %32 = vector.broadcast %31 : vector<2x8x1xf32> to vector<2x8x8xf32>
    %33 = arith.divf %29, %32 : vector<2x8x8xf32>
    %c0_19 = arith.constant 0 : index
    %c0_20 = arith.constant 0 : index
    %c0_21 = arith.constant 0 : index
    %c0_22 = arith.constant 0 : index
    %34 = vector.load %arg11[%c0_19, %c0_20, %c0_21, %c0_22] : memref<2x4x8x8xf32, #tpu.memory_space<vmem>>, vector<2x1x8x8xf32>
    %35 = vector.shape_cast %34 : vector<2x1x8x8xf32> to vector<2x8x8xf32>
    %36 = vector.shape_cast %33 : vector<2x8x8xf32> to vector<2x1x8x8xf32>
    tpu.vector_store %arg11[%c0_19, %c0_20, %c0_21, %c0_22], %36 {strides = array<i32>} : memref<2x4x8x8xf32, #tpu.memory_space<vmem>>, vector<2x1x8x8xf32>,
    %37 = arith.truncf %33 : vector<2x8x8xf32> to vector<2x8x8xbf16>
    "tpu.trace_start"() <{level = 10 : i32, message = "bqk,bkd->bqd"}> : () -> ()
    %cst_23 = arith.constant dense<0.000000e+00> : vector<2x8x8xf32>
    %38 = tpu.matmul %37, %23, %cst_23 {dimension_numbers = #tpu.dot_dimension_numbers<[2], [1], [1], [2], [0, 0, 0, 1, 1, 2], [0], [0]>} : vector<2x8x8xbf16>, vector<2x8x8xbf16>, vector<2x8x8xf32> -> vector<2x8x8xf32>
    "tpu.trace_stop"() : () -> ()
    %39 = vector.extract_strided_slice %16 {offsets = [0, 0, 8], sizes = [2, 8, 8], strides = [1, 1, 1]} : vector<2x8x32xbf16> to vector<2x8x8xbf16>
    %40 = vector.extract_strided_slice %18 {offsets = [0, 0, 8], sizes = [2, 8, 8], strides = [1, 1, 1]} : vector<2x8x32xbf16> to vector<2x8x8xbf16>
    %41 = vector.extract_strided_slice %20 {offsets = [0, 0, 8], sizes = [2, 8, 8], strides = [1, 1, 1]} : vector<2x8x32xbf16> to vector<2x8x8xbf16>
    "tpu.trace_start"() <{level = 10 : i32, message = "bqd,bkd->bqk"}> : () -> ()
    %cst_24 = arith.constant dense<0.000000e+00> : vector<2x8x8xf32>
    %42 = tpu.matmul %39, %40, %cst_24 {dimension_numbers = #tpu.dot_dimension_numbers<[2], [2], [1], [1], [0, 0, 0, 1, 1, 1], [0], [0]>} : vector<2x8x8xbf16>, vector<2x8x8xbf16>, vector<2x8x8xf32> -> vector<2x8x8xf32>
    "tpu.trace_stop"() : () -> ()
    %cst_25 = arith.constant dense<0xFF800000> : vector<2x8xf32>
    %43 = vector.multi_reduction <maximumf>, %42, %cst_25 [2] : vector<2x8x8xf32> to vector<2x8xf32>
    %44 = vector.shape_cast %43 : vector<2x8xf32> to vector<2x8x1xf32>
    %45 = vector.broadcast %44 : vector<2x8x1xf32> to vector<2x8x8xf32>
    %46 = arith.subf %42, %45 : vector<2x8x8xf32>
    %47 = math.exp %46 : vector<2x8x8xf32>
    %cst_26 = arith.constant dense<0.000000e+00> : vector<2x8xf32>
    %48 = vector.multi_reduction <add>, %47, %cst_26 [2] : vector<2x8x8xf32> to vector<2x8xf32>
    %49 = vector.shape_cast %48 : vector<2x8xf32> to vector<2x8x1xf32>
    %50 = vector.broadcast %49 : vector<2x8x1xf32> to vector<2x8x8xf32>
    %51 = arith.divf %47, %50 : vector<2x8x8xf32>
    %c0_27 = arith.constant 0 : index
    %c1 = arith.constant 1 : index
    %c0_28 = arith.constant 0 : index
    %c0_29 = arith.constant 0 : index
    %52 = vector.load %arg11[%c0_27, %c1, %c0_28, %c0_29] : memref<2x4x8x8xf32, #tpu.memory_space<vmem>>, vector<2x1x8x8xf32>
    %53 = vector.shape_cast %52 : vector<2x1x8x8xf32> to vector<2x8x8xf32>
    %54 = vector.shape_cast %51 : vector<2x8x8xf32> to vector<2x1x8x8xf32>
    tpu.vector_store %arg11[%c0_27, %c1, %c0_28, %c0_29], %54 {strides = array<i32>} : memref<2x4x8x8xf32, #tpu.memory_space<vmem>>, vector<2x1x8x8xf32>,
    %55 = arith.truncf %51 : vector<2x8x8xf32> to vector<2x8x8xbf16>
    "tpu.trace_start"() <{level = 10 : i32, message = "bqk,bkd->bqd"}> : () -> ()
    %cst_30 = arith.constant dense<0.000000e+00> : vector<2x8x8xf32>
    %56 = tpu.matmul %55, %41, %cst_30 {dimension_numbers = #tpu.dot_dimension_numbers<[2], [1], [1], [2], [0, 0, 0, 1, 1, 2], [0], [0]>} : vector<2x8x8xbf16>, vector<2x8x8xbf16>, vector<2x8x8xf32> -> vector<2x8x8xf32>
    "tpu.trace_stop"() : () -> ()
    %57 = vector.extract_strided_slice %16 {offsets = [0, 0, 16], sizes = [2, 8, 8], strides = [1, 1, 1]} : vector<2x8x32xbf16> to vector<2x8x8xbf16>
    %58 = vector.extract_strided_slice %18 {offsets = [0, 0, 16], sizes = [2, 8, 8], strides = [1, 1, 1]} : vector<2x8x32xbf16> to vector<2x8x8xbf16>
    %59 = vector.extract_strided_slice %20 {offsets = [0, 0, 16], sizes = [2, 8, 8], strides = [1, 1, 1]} : vector<2x8x32xbf16> to vector<2x8x8xbf16>
    "tpu.trace_start"() <{level = 10 : i32, message = "bqd,bkd->bqk"}> : () -> ()
    %cst_31 = arith.constant dense<0.000000e+00> : vector<2x8x8xf32>
    %60 = tpu.matmul %57, %58, %cst_31 {dimension_numbers = #tpu.dot_dimension_numbers<[2], [2], [1], [1], [0, 0, 0, 1, 1, 1], [0], [0]>} : vector<2x8x8xbf16>, vector<2x8x8xbf16>, vector<2x8x8xf32> -> vector<2x8x8xf32>
    "tpu.trace_stop"() : () -> ()
    %cst_32 = arith.constant dense<0xFF800000> : vector<2x8xf32>
    %61 = vector.multi_reduction <maximumf>, %60, %cst_32 [2] : vector<2x8x8xf32> to vector<2x8xf32>
    %62 = vector.shape_cast %61 : vector<2x8xf32> to vector<2x8x1xf32>
    %63 = vector.broadcast %62 : vector<2x8x1xf32> to vector<2x8x8xf32>
    %64 = arith.subf %60, %63 : vector<2x8x8xf32>
    %65 = math.exp %64 : vector<2x8x8xf32>
    %cst_33 = arith.constant dense<0.000000e+00> : vector<2x8xf32>
    %66 = vector.multi_reduction <add>, %65, %cst_33 [2] : vector<2x8x8xf32> to vector<2x8xf32>
    %67 = vector.shape_cast %66 : vector<2x8xf32> to vector<2x8x1xf32>
    %68 = vector.broadcast %67 : vector<2x8x1xf32> to vector<2x8x8xf32>
    %69 = arith.divf %65, %68 : vector<2x8x8xf32>
    %c0_34 = arith.constant 0 : index
    %c2 = arith.constant 2 : index
    %c0_35 = arith.constant 0 : index
    %c0_36 = arith.constant 0 : index
    %70 = vector.load %arg11[%c0_34, %c2, %c0_35, %c0_36] : memref<2x4x8x8xf32, #tpu.memory_space<vmem>>, vector<2x1x8x8xf32>
    %71 = vector.shape_cast %70 : vector<2x1x8x8xf32> to vector<2x8x8xf32>
    %72 = vector.shape_cast %69 : vector<2x8x8xf32> to vector<2x1x8x8xf32>
    tpu.vector_store %arg11[%c0_34, %c2, %c0_35, %c0_36], %72 {strides = array<i32>} : memref<2x4x8x8xf32, #tpu.memory_space<vmem>>, vector<2x1x8x8xf32>,
    %73 = arith.truncf %69 : vector<2x8x8xf32> to vector<2x8x8xbf16>
    "tpu.trace_start"() <{level = 10 : i32, message = "bqk,bkd->bqd"}> : () -> ()
    %cst_37 = arith.constant dense<0.000000e+00> : vector<2x8x8xf32>
    %74 = tpu.matmul %73, %59, %cst_37 {dimension_numbers = #tpu.dot_dimension_numbers<[2], [1], [1], [2], [0, 0, 0, 1, 1, 2], [0], [0]>} : vector<2x8x8xbf16>, vector<2x8x8xbf16>, vector<2x8x8xf32> -> vector<2x8x8xf32>
    "tpu.trace_stop"() : () -> ()
    %75 = vector.extract_strided_slice %16 {offsets = [0, 0, 24], sizes = [2, 8, 8], strides = [1, 1, 1]} : vector<2x8x32xbf16> to vector<2x8x8xbf16>
    %76 = vector.extract_strided_slice %18 {offsets = [0, 0, 24], sizes = [2, 8, 8], strides = [1, 1, 1]} : vector<2x8x32xbf16> to vector<2x8x8xbf16>
    %77 = vector.extract_strided_slice %20 {offsets = [0, 0, 24], sizes = [2, 8, 8], strides = [1, 1, 1]} : vector<2x8x32xbf16> to vector<2x8x8xbf16>
    "tpu.trace_start"() <{level = 10 : i32, message = "bqd,bkd->bqk"}> : () -> ()
    %cst_38 = arith.constant dense<0.000000e+00> : vector<2x8x8xf32>
    %78 = tpu.matmul %75, %76, %cst_38 {dimension_numbers = #tpu.dot_dimension_numbers<[2], [2], [1], [1], [0, 0, 0, 1, 1, 1], [0], [0]>} : vector<2x8x8xbf16>, vector<2x8x8xbf16>, vector<2x8x8xf32> -> vector<2x8x8xf32>
    "tpu.trace_stop"() : () -> ()
    %cst_39 = arith.constant dense<0xFF800000> : vector<2x8xf32>
    %79 = vector.multi_reduction <maximumf>, %78, %cst_39 [2] : vector<2x8x8xf32> to vector<2x8xf32>
    %80 = vector.shape_cast %79 : vector<2x8xf32> to vector<2x8x1xf32>
    %81 = vector.broadcast %80 : vector<2x8x1xf32> to vector<2x8x8xf32>
    %82 = arith.subf %78, %81 : vector<2x8x8xf32>
    %83 = math.exp %82 : vector<2x8x8xf32>
    %cst_40 = arith.constant dense<0.000000e+00> : vector<2x8xf32>
    %84 = vector.multi_reduction <add>, %83, %cst_40 [2] : vector<2x8x8xf32> to vector<2x8xf32>
    %85 = vector.shape_cast %84 : vector<2x8xf32> to vector<2x8x1xf32>
    %86 = vector.broadcast %85 : vector<2x8x1xf32> to vector<2x8x8xf32>
    %87 = arith.divf %83, %86 : vector<2x8x8xf32>
    %c0_41 = arith.constant 0 : index
    %c3 = arith.constant 3 : index
    %c0_42 = arith.constant 0 : index
    %c0_43 = arith.constant 0 : index
    %88 = vector.load %arg11[%c0_41, %c3, %c0_42, %c0_43] : memref<2x4x8x8xf32, #tpu.memory_space<vmem>>, vector<2x1x8x8xf32>
    %89 = vector.shape_cast %88 : vector<2x1x8x8xf32> to vector<2x8x8xf32>
    %90 = vector.shape_cast %87 : vector<2x8x8xf32> to vector<2x1x8x8xf32>
    tpu.vector_store %arg11[%c0_41, %c3, %c0_42, %c0_43], %90 {strides = array<i32>} : memref<2x4x8x8xf32, #tpu.memory_space<vmem>>, vector<2x1x8x8xf32>,
    %91 = arith.truncf %87 : vector<2x8x8xf32> to vector<2x8x8xbf16>
    "tpu.trace_start"() <{level = 10 : i32, message = "bqk,bkd->bqd"}> : () -> ()
    %cst_44 = arith.constant dense<0.000000e+00> : vector<2x8x8xf32>
    %92 = tpu.matmul %91, %77, %cst_44 {dimension_numbers = #tpu.dot_dimension_numbers<[2], [1], [1], [2], [0, 0, 0, 1, 1, 2], [0], [0]>} : vector<2x8x8xbf16>, vector<2x8x8xbf16>, vector<2x8x8xf32> -> vector<2x8x8xf32>
    "tpu.trace_stop"() : () -> ()
    %93 = tpu.concatenate %38, %56, %74, %92 in 2 : vector<2x8x8xf32>, vector<2x8x8xf32>, vector<2x8x8xf32>, vector<2x8x8xf32> -> vector<2x8x32xf32>
    %94 = vector.shape_cast %93 : vector<2x8x32xf32> to vector<16x32xf32>
    %95 = arith.truncf %94 : vector<16x32xf32> to vector<16x32xbf16>
    %c0_45 = arith.constant 0 : index
    %c0_46 = arith.constant 0 : index
    %96 = vector.load %arg7[%c0_45, %c0_46] : memref<32x32xbf16, #tpu.memory_space<vmem>>, vector<32x32xbf16>
    %cst_47 = arith.constant dense<0.000000e+00> : vector<16x32xf32>
    %97 = tpu.matmul %95, %96, %cst_47 {dimension_numbers = #tpu.dot_dimension_numbers<[1], [0], [0], [1], [0, 0, 1, 1], [], []>} : vector<16x32xbf16>, vector<32x32xbf16>, vector<16x32xf32> -> vector<16x32xf32>
    %98 = vector.shape_cast %97 : vector<16x32xf32> to vector<2x8x32xf32>
    %99 = arith.addf %98, %0 : vector<2x8x32xf32>
    %cst_48 = arith.constant dense<0.000000e+00> : vector<2x8xf32>
    %100 = vector.multi_reduction <add>, %99, %cst_48 [2] : vector<2x8x32xf32> to vector<2x8xf32>
    %101 = vector.shape_cast %100 : vector<2x8xf32> to vector<2x8x1xf32>
    %cst_49 = arith.constant 3.200000e+01 : f32
    %102 = vector.broadcast %cst_49 : f32 to vector<2x8x1xf32>
    %103 = arith.divf %101, %102 : vector<2x8x1xf32>
    %104 = vector.broadcast %103 : vector<2x8x1xf32> to vector<2x8x32xf32>
    %105 = arith.subf %99, %104 : vector<2x8x32xf32>
    %106 = arith.mulf %105, %105 : vector<2x8x32xf32>
    %cst_50 = arith.constant dense<0.000000e+00> : vector<2x8xf32>
    %107 = vector.multi_reduction <add>, %106, %cst_50 [2] : vector<2x8x32xf32> to vector<2x8xf32>
    %108 = vector.shape_cast %107 : vector<2x8xf32> to vector<2x8x1xf32>
    %cst_51 = arith.constant 3.200000e+01 : f32
    %109 = vector.broadcast %cst_51 : f32 to vector<2x8x1xf32>
    %110 = arith.divf %108, %109 : vector<2x8x1xf32>
    %111 = vector.broadcast %103 : vector<2x8x1xf32> to vector<2x8x32xf32>
    %112 = arith.subf %99, %111 : vector<2x8x32xf32>
    %cst_52 = arith.constant 9.99999974E-6 : f32
    %113 = vector.broadcast %cst_52 : f32 to vector<2x8x1xf32>
    %114 = arith.addf %110, %113 : vector<2x8x1xf32>
    %115 = math.rsqrt %114 : vector<2x8x1xf32>
    %116 = vector.broadcast %115 : vector<2x8x1xf32> to vector<2x8x32xf32>
    %117 = arith.mulf %112, %116 : vector<2x8x32xf32>
    %c0_53 = arith.constant 0 : index
    %c0_54 = arith.constant 0 : index
    %118 = vector.load %arg8[%c0_53, %c0_54] : memref<1x32xf32, #tpu.memory_space<vmem>>, vector<1x32xf32>
    %119 = vector.shape_cast %118 : vector<1x32xf32> to vector<1x1x32xf32>
    %120 = vector.broadcast %119 : vector<1x1x32xf32> to vector<2x8x32xf32>
    %121 = arith.mulf %117, %120 : vector<2x8x32xf32>
    %c0_55 = arith.constant 0 : index
    %c0_56 = arith.constant 0 : index
    %122 = vector.load %arg9[%c0_55, %c0_56] : memref<1x32xf32, #tpu.memory_space<vmem>>, vector<1x32xf32>
    %123 = vector.shape_cast %122 : vector<1x32xf32> to vector<1x1x32xf32>
    %124 = vector.broadcast %123 : vector<1x1x32xf32> to vector<2x8x32xf32>
    %125 = arith.addf %121, %124 : vector<2x8x32xf32>
    %c0_57 = arith.constant 0 : index
    %c0_58 = arith.constant 0 : index
    %c0_59 = arith.constant 0 : index
    %126 = vector.load %arg10[%c0_57, %c0_58, %c0_59] : memref<2x8x32xf32, #tpu.memory_space<vmem>>, vector<2x8x32xf32>
    tpu.vector_store %arg10[%c0_57, %c0_58, %c0_59], %125 {strides = array<i32>} : memref<2x8x32xf32, #tpu.memory_space<vmem>>, vector<2x8x32xf32>,
    return
  }
  func.func @transform_0(%arg0: i32) -> (i32, i32, i32) {
    %c0_i32 = arith.constant 0 : i32
    %c0_i32_0 = arith.constant 0 : i32
    %c0_i32_1 = arith.constant 0 : i32
    return %arg0, %c0_i32, %c0_i32_0 : i32, i32, i32
  }
  func.func @transform_1(%arg0: i32) -> (i32, i32, i32) {
    %c0_i32 = arith.constant 0 : i32
    %c0_i32_0 = arith.constant 0 : i32
    %c0_i32_1 = arith.constant 0 : i32
    return %arg0, %c0_i32, %c0_i32_0 : i32, i32, i32
  }
  func.func @transform_2(%arg0: i32) -> (i32, i32, i32) {
    %c0_i32 = arith.constant 0 : i32
    %c0_i32_0 = arith.constant 0 : i32
    %c0_i32_1 = arith.constant 0 : i32
    return %arg0, %c0_i32, %c0_i32_0 : i32, i32, i32
  }
  func.func @transform_3(%arg0: i32) -> (i32, i32) {
    %c0_i32 = arith.constant 0 : i32
    %c0_i32_0 = arith.constant 0 : i32
    %c0_i32_1 = arith.constant 0 : i32
    return %c0_i32, %c0_i32_0 : i32, i32
  }
  func.func @transform_4(%arg0: i32) -> (i32, i32) {
    %c0_i32 = arith.constant 0 : i32
    %c0_i32_0 = arith.constant 0 : i32
    %c0_i32_1 = arith.constant 0 : i32
    return %c0_i32, %c0_i32_0 : i32, i32
  }
  func.func @transform_5(%arg0: i32) -> (i32, i32) {
    %c0_i32 = arith.constant 0 : i32
    %c0_i32_0 = arith.constant 0 : i32
    %c0_i32_1 = arith.constant 0 : i32
    return %c0_i32, %c0_i32_0 : i32, i32
  }
  func.func @transform_6(%arg0: i32) -> (i32, i32) {
    %c0_i32 = arith.constant 0 : i32
    %c0_i32_0 = arith.constant 0 : i32
    %c0_i32_1 = arith.constant 0 : i32
    return %c0_i32, %c0_i32_0 : i32, i32
  }
  func.func @transform_7(%arg0: i32) -> (i32, i32) {
    %c0_i32 = arith.constant 0 : i32
    %c0_i32_0 = arith.constant 0 : i32
    %c0_i32_1 = arith.constant 0 : i32
    return %c0_i32, %c0_i32_0 : i32, i32
  }
  func.func @transform_8(%arg0: i32) -> (i32, i32) {
    %c0_i32 = arith.constant 0 : i32
    %c0_i32_0 = arith.constant 0 : i32
    %c0_i32_1 = arith.constant 0 : i32
    return %c0_i32, %c0_i32_0 : i32, i32
  }
  func.func @transform_9(%arg0: i32) -> (i32, i32, i32) {
    %c0_i32 = arith.constant 0 : i32
    %c0_i32_0 = arith.constant 0 : i32
    %c0_i32_1 = arith.constant 0 : i32
    return %arg0, %c0_i32, %c0_i32_0 : i32, i32, i32
  }
  func.func @transform_10(%arg0: i32) -> (i32, i32, i32, i32) {
    %c0_i32 = arith.constant 0 : i32
    %c0_i32_0 = arith.constant 0 : i32
    %c0_i32_1 = arith.constant 0 : i32
    %c0_i32_2 = arith.constant 0 : i32
    return %arg0, %c0_i32, %c0_i32_0, %c0_i32_1 : i32, i32, i32, i32
  }
}

</mosaic_0001>

<bundles_post_ra>
// kernel: tpu_custom_call.1
= control target key start
LH: loop header
LB: loop body
LE: loop exit
PB: predicated region body
PF: predicated region fallthrough
CT: control target
= control target key end

     0   :  { %16 = vsyncpa [#allocation3], 0  ;;  %s2285_s0 = inlined_call_operand.hbm [shape: f32[2,8,32], index: 0, kind: input, shape index: {}]   ;;  %s2286_s1 = inlined_call_operand.hbm [shape: f32[2,8,32], index: 1, kind: input, shape index: {}]   ;;  %s2287_s2 = inlined_call_operand.hbm [shape: f32[2,8,32], index: 2, kind: input, shape index: {}]   ;;  %s2288_s3 = inlined_call_operand.hbm [shape: bf16[32,32], index: 3, kind: input, shape index: {}]   ;;  %s2289_s4 = inlined_call_operand.hbm [shape: bf16[32,32], index: 4, kind: input, shape index: {}]   ;;  %s2290_s5 = inlined_call_operand.vmem [shape: bf16[32,32], index: 5, kind: input, shape index: {}]   ;;  %s2291_s6 = inlined_call_operand.hbm [shape: bf16[32,32], index: 6, kind: input, shape index: {}]   ;;  %s2292_s7 = inlined_call_operand.vmem [shape: f32[1,32], index: 7, kind: input, shape index: {}]   ;;  %s2293_s8 = inlined_call_operand.vmem [shape: f32[1,32], index: 8, kind: input, shape index: {}]   ;;  %s2294_s9 = inlined_call_operand.hbm [shape: f32[2,8,32], index: 9, kind: output, shape index: {0}]   ;;  %s2295_s10 = inlined_call_operand.hbm [shape: f32[2,4,8,8], index: 10, kind: output, shape index: {1}]  }
   0x1   :  { %17 = vsyncpa [#allocation6], 0 }
   0x2   :  { %18 = vsyncpa [#allocation9], 0 }
   0x3   :  { %19 = vsyncpa [#allocation12], 0 }
   0x4   :  { %20 = vsyncpa [#allocation4], 0 }
   0x5   :  { %21 = vsyncpa [#allocation15], 0  ;;  %s1848_s13 = smov [#allocation5]   ;;  %s1849_s15 = smov [#allocation8]  }
   0x6   :  { %s39_s14 = sshll.u32 %s1848_s13, 4  ;;  %s63_s16 = sshll.u32 %s1849_s15, 4  ;;  %s40_s14 = int_to_ptr.vmem [resolvable:$true] %s39_s14  ;;  %s1922_s16 = int_to_ptr.vmem [resolvable:$true] %s63_s16 }
   0x7   :  { %s1660_s19 = scalar_lea.hbm %s2286_s1, 256 }
   0x8   :  { %p1661_p0 = scmp.ne.s32.totalorder %s2286_s1, %s1660_s19  ;;  %p1664_p1 = scmp.lt.u32.totalorder %s1660_s19, %s2286_s1 }
   0xa   :  { %p1666_p2 = pnand %p1664_p1, %p1661_p0 }
   0xc   :  { %1669 = shalt.err (!%p1666_p2)
}
   0xd   :  { %s1670_s24 = scalar_lea.vmem %s40_s14, 256  ;;  %p1675_p4 = scmp.lt.s32.totalorder %s40_s14, %s40_s14 }
   0xe   :  { %p1671_p3 = scmp.ne.s32.totalorder %s40_s14, %s1670_s24  ;;  %p1676_p5 = scmp.lt.s32.totalorder %s1670_s24, %s1670_s24 }
  0x10   :  { %p1677_p6 = por %p1676_p5, %p1675_p4 }
  0x12   :  { %p1678_p7 = pnand %p1677_p6, %p1671_p3 }
  0x14   :  { %1681 = shalt.err (!%p1678_p7)
}
  0x15   :  { %s1850_s25 = smov 128   ;;  %s1851_s26 = smov 8  }
  0x16   :  { %45 = dma.hbm_to_vmem [thread:$0]  %s2286_s1, 256, %s40_s14, [#allocation6], %s1850_s25, %s1850_s25, %s1851_s26  }
  0x17   :  { %s1682_s11 = scalar_lea.hbm %s2288_s3, 256 }
  0x18   :  { %p1683_p8 = scmp.ne.s32.totalorder %s2288_s3, %s1682_s11  ;;  %p1686_p9 = scmp.lt.u32.totalorder %s1682_s11, %s2288_s3 }
  0x1a   :  { %p1688_p10 = pnand %p1686_p9, %p1683_p8 }
  0x1c   :  { %1691 = shalt.err (!%p1688_p10)
}
  0x1d   :  { %s1692_s18 = scalar_lea.vmem %s1922_s16, 256  ;;  %p1697_p12 = scmp.lt.s32.totalorder %s1922_s16, %s1922_s16 }
  0x1e   :  { %p1693_p11 = scmp.ne.s32.totalorder %s1922_s16, %s1692_s18  ;;  %p1698_p13 = scmp.lt.s32.totalorder %s1692_s18, %s1692_s18 }
  0x20   :  { %p1699_p0 = por %p1698_p13, %p1697_p12 }
  0x22   :  { %p1700_p1 = pnand %p1699_p0, %p1693_p11 }
  0x24   :  { %1703 = shalt.err (!%p1700_p1)
}
  0x25   :  { %s1852_s1 = smov 64   ;;  %s1853_s14 = smov 4  }
  0x26   :  { %69 = dma.hbm_to_vmem [thread:$0]  %s2288_s3, 256, %s1922_s16, [#allocation9], %s1852_s1, %s1852_s1, %s1853_s14  }
  0x27   :  { %s1854_s21 = smov [#allocation2]   ;;  %s1855_s23 = smov [#allocation7]  }
  0x28   :  { %s27_s22 = sshll.u32 %s1854_s21, 4  ;;  %s51_s24 = sshll.u32 %s1855_s23, 4  ;;  %s28_s22 = int_to_ptr.vmem [resolvable:$true] %s27_s22  ;;  %s1959_s24 = int_to_ptr.vmem [resolvable:$true] %s51_s24 }
  0x29   :  { %s1704_s29 = scalar_lea.hbm %s2285_s0, 256 }
  0x2a   :  { %p1705_p2 = scmp.ne.s32.totalorder %s2285_s0, %s1704_s29  ;;  %p1708_p3 = scmp.lt.u32.totalorder %s1704_s29, %s2285_s0 }
  0x2c   :  { %p1710_p4 = pnand %p1708_p3, %p1705_p2 }
  0x2e   :  { %1713 = shalt.err (!%p1710_p4)
}
  0x2f   :  { %s1714_s3 = scalar_lea.vmem %s28_s22, 256  ;;  %p1719_p6 = scmp.lt.s32.totalorder %s28_s22, %s28_s22 }
  0x30   :  { %p1715_p5 = scmp.ne.s32.totalorder %s28_s22, %s1714_s3  ;;  %p1720_p7 = scmp.lt.s32.totalorder %s1714_s3, %s1714_s3 }
  0x32   :  { %p1721_p8 = por %p1720_p7, %p1719_p6 }
  0x34   :  { %p1722_p9 = pnand %p1721_p8, %p1715_p5 }
  0x36   :  { %1725 = shalt.err (!%p1722_p9)
}
  0x37   :  { %33 = dma.hbm_to_vmem [thread:$0]  %s2285_s0, 256, %s28_s22, [#allocation3], %s1850_s25, %s1850_s25, %s1851_s26  }
  0x38   :  { %s1726_s19 = scalar_lea.hbm %s2287_s2, 256 }
  0x39   :  { %p1727_p10 = scmp.ne.s32.totalorder %s2287_s2, %s1726_s19  ;;  %p1730_p11 = scmp.lt.u32.totalorder %s1726_s19, %s2287_s2 }
  0x3b   :  { %p1732_p12 = pnand %p1730_p11, %p1727_p10 }
  0x3d   :  { %1735 = shalt.err (!%p1732_p12)
}
  0x3e   :  { %s1736_s28 = scalar_lea.vmem %s1959_s24, 256  ;;  %p1741_p0 = scmp.lt.s32.totalorder %s1959_s24, %s1959_s24 }
  0x3f   :  { %p1737_p13 = scmp.ne.s32.totalorder %s1959_s24, %s1736_s28  ;;  %p1742_p1 = scmp.lt.s32.totalorder %s1736_s28, %s1736_s28 }
  0x41   :  { %p1743_p2 = por %p1742_p1, %p1741_p0 }
  0x43   :  { %p1744_p3 = pnand %p1743_p2, %p1737_p13 }
  0x45   :  { %1747 = shalt.err (!%p1744_p3)
}
  0x46   :  { %57 = dma.hbm_to_vmem [thread:$0]  %s2287_s2, 256, %s1959_s24, [#allocation6], %s1850_s25, %s1850_s25, %s1851_s26  }
  0x47   :  { %s1856_s29 = smov [#allocation10]   ;;  %s1857_s11 = smov [#allocation11]  }
  0x48   :  { %s75_s30 = sshll.u32 %s1856_s29, 4  ;;  %s89_s12 = sshll.u32 %s1857_s11, 4  ;;  %s76_s30 = int_to_ptr.vmem [resolvable:$true] %s75_s30  ;;  %s1996_s12 = int_to_ptr.vmem [resolvable:$true] %s89_s12 }
  0x49   :  { %s1748_s16 = scalar_lea.hbm %s2289_s4, 256 }
  0x4a   :  { %p1749_p4 = scmp.ne.s32.totalorder %s2289_s4, %s1748_s16  ;;  %p1752_p5 = scmp.lt.u32.totalorder %s1748_s16, %s2289_s4 }
  0x4c   :  { %p1754_p6 = pnand %p1752_p5, %p1749_p4 }
  0x4e   :  { %1757 = shalt.err (!%p1754_p6)
}
  0x4f   :  { %s1758_s2 = scalar_lea.vmem %s76_s30, 256  ;;  %p1763_p8 = scmp.lt.s32.totalorder %s76_s30, %s76_s30 }
  0x50   :  { %p1759_p7 = scmp.ne.s32.totalorder %s76_s30, %s1758_s2  ;;  %p1764_p9 = scmp.lt.s32.totalorder %s1758_s2, %s1758_s2 }
  0x52   :  { %p1765_p10 = por %p1764_p9, %p1763_p8 }
  0x54   :  { %p1766_p11 = pnand %p1765_p10, %p1759_p7 }
  0x56   :  { %1769 = shalt.err (!%p1766_p11)
}
  0x57   :  { %81 = dma.hbm_to_vmem [thread:$0]  %s2289_s4, 256, %s76_s30, [#allocation9], %s1852_s1, %s1852_s1, %s1853_s14  }
  0x58   :  { %s1770_s27 = scalar_lea.hbm %s2291_s6, 256 }
  0x59   :  { %p1771_p12 = scmp.ne.s32.totalorder %s2291_s6, %s1770_s27  ;;  %p1774_p13 = scmp.lt.u32.totalorder %s1770_s27, %s2291_s6 }
  0x5b   :  { %p1776_p0 = pnand %p1774_p13, %p1771_p12 }
  0x5d   :  { %1779 = shalt.err (!%p1776_p0)
}
  0x5e   :  { %s1780_s11 = scalar_lea.vmem %s1996_s12, 256  ;;  %p1785_p2 = scmp.lt.s32.totalorder %s1996_s12, %s1996_s12 }
  0x5f   :  { %p1781_p1 = scmp.ne.s32.totalorder %s1996_s12, %s1780_s11  ;;  %p1786_p3 = scmp.lt.s32.totalorder %s1780_s11, %s1780_s11 }
  0x61   :  { %p1787_p4 = por %p1786_p3, %p1785_p2 }
  0x63   :  { %p1788_p5 = pnand %p1787_p4, %p1781_p1 }
  0x65   :  { %1791 = shalt.err (!%p1788_p5)
}
  0x66   :  { %95 = dma.hbm_to_vmem [thread:$0]  %s2291_s6, 256, %s1996_s12, [#allocation12], %s1852_s1, %s1852_s1, %s1853_s14  }
  0x67   :  { %1836 = dma.done.wait [#allocation3], 256  }
  0x68   :  { %1837 = vsyncadd [#allocation3], 4294967040 }
  0x69   :  { %1838 = dma.done.wait [#allocation6], 512  }
  0x6a   :  { %1839 = vsyncadd [#allocation6], 4294966784 }
  0x6b   :  { %1840 = dma.done.wait [#allocation9], 512  }
  0x6c   :  { %1841 = vsyncadd [#allocation9], 4294966784 }
  0x6d   :  { %1842 = dma.done.wait [#allocation12], 256  }
  0x6e   :  { %1843 = vsyncadd [#allocation12], 4294967040  ;;  %v1858_v0 = vmov 0.0   ;;  %vm1859_vm0 = vmmov 0   ;;  %v1616_v1 = vld [vmem:[#allocation10] sm:$0xff]   ;;  %v1617_v2 = vld [vmem:[#allocation10 + $0x8] sm:$0xff]  }
  0x6f   :  { %1462 = vmatprep.subr.bf16.mxu1 %v1858_v0  ;;  %1454 = vmatprep.subr.bf16.mxu0 %v1858_v0  ;;  %v1618_v3 = vld [vmem:[#allocation8] sm:$0xff]   ;;  %v123_v5 = vld [vmem:[#allocation5 + $0x8] sm:$0xff]  ;;  %v2040_v7 = vld [vmem:[#allocation2] sm:$0xff]  ;;  %vm144_vm1 = vcmask 261120   ;;  %vm315_vm2 = vcmask 64512   ;;  %vm437_vm3 = vcmask 1043456  }
  0x70   :  { %1466 = vmatprep.mubr.msk.bf16.mxu1 %vm1859_vm0, %v1858_v0  ;;  %1458 = vmatprep.mubr.msk.bf16.mxu0 %vm1859_vm0, %v1858_v0  ;;  %v122_v4 = vld [vmem:[#allocation5] sm:$0xff]  ;;  %v1619_v6 = vld [vmem:[#allocation8 + $0x8] sm:$0xff]   ;;  %v2043_v9 = vld [vmem:[#allocation2 + $0x8] sm:$0xff]  ;;  %s1861_s13 = smov 112   ;;  %s1862_s3 = smov 104   ;;  %vm1228_vm4 = vcmask 130048  }
  0x71   :  { %1463 = vmatpush3.bf16.msra.mxu1 %v1616_v1  ;;  %1455 = vmatpush3.bf16.msra.mxu0 %v1618_v3  ;;  %v124_v8 = vpack.c.bf16 %v123_v5, %v122_v4  ;;  %v121_v10 = vpack.c.bf16 %v2043_v9, %v2040_v7  ;;  %v1620_v11 = vld [vmem:[%s2290_s5] sm:$0xff]   ;;  %v1621_v12 = vld [vmem:[%s2290_s5 + $0x8] sm:$0xff]   ;;  %s1860_s5 = smov 120   ;;  %s1863_s16 = smov 16   ;;  %vm1231_vm5 = vcmask 195584  }
  0x72   :  { %1464 = vmatprep.subr.bf16.mxu1 %v1858_v0  ;;  %1456 = vmatprep.subr.bf16.mxu0 %v1858_v0  ;;  %v125_v13 = vld [vmem:[#allocation7] sm:$0xff]  ;;  %v126_v14 = vld [vmem:[#allocation7 + $0x8] sm:$0xff]  ;;  %s1864_s15 = smov 24   ;;  %s1865_s17 = smov [#allocation14]  }
  0x73   :  { %v127_v15 = vpack.c.bf16 %v126_v14, %v125_v13  ;;  %s1361_s18 = sshll.u32 %s1865_s17, 4  ;;  %s1362_s18 = int_to_ptr.vmem [resolvable:$true] %s1361_s18 }
  0x74   :  { %s1792_s19 = scalar_lea.vmem %s1362_s18, 1024  ;;  %p1797_p7 = scmp.lt.s32.totalorder %s1362_s18, %s1362_s18 }
  0x75   :  { %1465 = vmatpush3.bf16.msra.mxu1 %v1617_v2  ;;  %1457 = vmatpush3.bf16.msra.mxu0 %v1619_v6  ;;  %p1793_p6 = scmp.ne.s32.totalorder %s1362_s18, %s1792_s19  ;;  %p1798_p8 = scmp.lt.s32.totalorder %s1792_s19, %s1792_s19 }
  0x76   :  { %1478 = vmatprep.subr.bf16.mxu1 %v1858_v0  ;;  %1470 = vmatprep.subr.bf16.mxu0 %v1858_v0 }
  0x77   :  { %p1799_p9 = por %p1798_p8, %p1797_p7 }
  0x78   :  { %1467 = vmatmul.mubr.msk.bf16.vlgmr.msra.gmra.mrb[0].mxu1 %vm144_vm1, %v124_v8  ;;  %1459 = vmatmul.mubr.msk.bf16.vlgmr.msra.gmra.mrb[0].mxu0 %vm144_vm1, %v121_v10 }
  0x79   :  { %1480 = vmatprep.mubr.msk.bf16.mxu1 %vm1859_vm0, %v1858_v0  ;;  %1471 = vmatpush3.bf16.msra.mxu0 %v1620_v11  ;;  %p1800_p10 = pnand %p1799_p9, %p1793_p6 }
  0x7a   :  { %1474 = vmatprep.mubr.msk.bf16.mxu0 %vm1859_vm0, %v1858_v0  ;;  %1472 = vmatprep.subr.bf16.mxu0 %v1858_v0 }
  0x7d   :  { %1473 = vmatpush3.bf16.msra.mxu0 %v1621_v12 }
  0x7e   :  { %1484 = vmatprep.subr.bf16.mxu0 %v1858_v0 }
  0x80   :  { %1475 = vmatmul.mubr.msk.bf16.vlgmr.msra.gmra.mrb[4].mxu0 %vm144_vm1, %v127_v15 }
  0x81   :  { %1486 = vmatprep.mubr.msk.bf16.mxu0 %vm1859_vm0, %v1858_v0 }
 0x14b   :  { %v242_v16 = vpop.f32.mrb[0].mxu1  ;;  %v182_v20 = vpop.f32.mrb[0].mxu0 }
 0x14c   :  { %v2066_v17 = vpack.c.bf16 %v242_v16, %v242_v16  ;;  %v1468_v18 = vpop.f32.mrb[1].mxu1  ;;  %v1460_v24 = vpop.f32.mrb[1].mxu0  ;;  %v2077_v28 = vpack.c.bf16 %v182_v20, %v182_v20 }
 0x14d   :  { %v245_v19 = vpop.f32.mrb[2].mxu1  ;;  %v185_v25 = vpop.f32.mrb[2].mxu0 }
 0x14e   :  { %v2068_v21 = vpack.c.bf16 %v245_v19, %v245_v19  ;;  %v1469_v22 = vpop.f32.mrb[3].mxu1  ;;  %v320_v23 = vsel %vm315_vm2, %v2066_v17, 0  ;;  %v1461_v27 = vpop.f32.mrb[3].mxu0  ;;  %v2080_v29 = vpack.c.bf16 %v185_v25, %v185_v25 }
 0x14f   :  { %1479 = vmatpush3.bf16.xpose.msra.mxu1 %v320_v23 }
 0x150   :  { %583 = vrot.lane.b32.xlu1 %v2068_v21, %s1860_s5  ;;  %v366_v26 = vsel %vm315_vm2, %v2068_v21, 0  ;;  %1490 = vmatprep.subr.bf16.mxu1 %v1858_v0 }
 0x151   :  { %1485 = vmatpush3.bf16.xpose.msra.mxu0 %v366_v26 }
 0x152   :  { %1496 = vmatprep.subr.bf16.mxu0 %v1858_v0 }
 0x153   :  { %v302_v30 = vpop.f32.mrb[4].mxu0 }
 0x154   :  { %v1476_v31 = vpop.f32.mrb[5].mxu0  ;;  %v2090_v32 = vpack.c.bf16 %v302_v30, %v302_v30 }
 0x155   :  { %v305_v33 = vpop.f32.mrb[6].mxu0 }
 0x156   :  { %1481 = vmatmul.mubr.msk.bf16.vlgmr.msra.gmra.mrb[4].mxu1 %vm315_vm2, %v2077_v28  ;;  %v2092_v34 = vpack.c.bf16 %v305_v33, %v305_v33  ;;  %v1477_v35 = vpop.f32.mrb[7].mxu0  ;;  %v439_v36 = vsel %vm437_vm3, %v2090_v32, 0 }
 0x157   :  { %1492 = vmatprep.mubr.msk.bf16.mxu1 %vm1859_vm0, %v1858_v0  ;;  %1491 = vmatpush3.bf16.msra.mxu1 %v439_v36 }
 0x158   :  { %1487 = vmatmul.mubr.msk.bf16.vlgmr.msra.gmra.mrb[8].mxu0 %vm315_vm2, %v2080_v29  ;;  %v485_v37 = vsel %vm437_vm3, %v2092_v34, 0  ;;  %1502 = vmatprep.subr.bf16.mxu1 %v1858_v0 }
 0x159   :  { %1498 = vmatprep.mubr.msk.bf16.mxu0 %vm1859_vm0, %v1858_v0  ;;  %1497 = vmatpush3.bf16.msra.mxu0 %v485_v37 }
 0x15a   :  { %1508 = vmatprep.subr.bf16.mxu0 %v1858_v0 }
 0x1c2   :  { %v584_v58 = vpop.permute.xlu1 %583 }
 0x1c3   :  { %v589_v6 = vsel %vm315_vm2, %v584_v58, 0 }
 0x229   :  { %v356_v38 = vpop.f32.mrb[4].mxu1 }
 0x22a   :  { %v1482_v39 = vpop.f32.mrb[5].mxu1  ;;  %v408_v40 = vsel %vm315_vm2, %v356_v38, -inf }
 0x22b   :  { %409 = vmax.xlane.f32.xlu0 %v408_v40  ;;  %v359_v41 = vpop.f32.mrb[6].mxu1  ;;  %v402_v42 = vpop.f32.mrb[8].mxu0 }
 0x22c   :  { %v1483_v43 = vpop.f32.mrb[7].mxu1  ;;  %v1488_v44 = vpop.f32.mrb[9].mxu0  ;;  %v411_v47 = vsel %vm315_vm2, %v402_v42, -inf }
 0x22d   :  { %v405_v45 = vpop.f32.mrb[10].mxu0 }
 0x22e   :  { %v1489_v46 = vpop.f32.mrb[11].mxu0 }
 0x22f   :  { %412 = vmax.xlane.f32.xlu0 %v411_v47 }
 0x245   :  { %531 = vrot.lane.b32.xlu0 %v2066_v17, %s1860_s5 }
 0x2b8   :  { %v410_v48 = vpop.xlane.xlu0 %409 }
 0x2b9   :  { %v414_v49 = vsub.f32 %v356_v38, %v410_v48 }
 0x2bb   :  { %v416_v50 = vmul.f32 1.442695, %v414_v49 }
 0x2bc   :  { %v413_v51 = vpop.xlane.xlu0 %412 }
 0x2bd   :  { %1624 = vpow2.f32 %v416_v50  ;;  %v415_v52 = vsub.f32 %v402_v42, %v413_v51 }
 0x2bf   :  { %v418_v53 = vmul.f32 1.442695, %v415_v52 }
 0x2c0   :  { %v532_v63 = vpop.permute.xlu0 %531 }
 0x2c1   :  { %1626 = vpow2.f32 %v418_v53  ;;  %v537_v3 = vsel %vm315_vm2, %v532_v63, 0 }
 0x2c7   :  { %v1625_v54 = vpop.eup %1624 }
 0x2c8   :  { %v420_v55 = vsel %vm315_vm2, %v1625_v54, 0.0 }
 0x2c9   :  { %421 = vadd.xlane.f32.xlu1 %v420_v55 }
 0x2cb   :  { %v1627_v56 = vpop.eup %1626 }
 0x2cc   :  { %v423_v57 = vsel %vm315_vm2, %v1627_v56, 0.0 }
 0x2cd   :  { %424 = vadd.xlane.f32.xlu1 %v423_v57 }
 0x2de   :  { %528 = vrot.lane.b32.xlu1 %v2077_v28, %s1860_s5 }
 0x2e2   :  { %580 = vrot.lane.b32.xlu1 %v2080_v29, %s1860_s5 }
 0x356   :  { %v422_v59 = vpop.xlane.xlu1 %421 }
 0x357   :  { %1628 = vrcp.f32 %v422_v59 }
 0x35a   :  { %v425_v60 = vpop.xlane.xlu1 %424 }
 0x35b   :  { %1630 = vrcp.f32 %v425_v60 }
 0x35e   :  { %v529_v8 = vpop.permute.xlu1 %528 }
 0x361   :  { %v1629_v61 = vpop.eup %1628 }
 0x362   :  { %v427_v62 = vmul.f32 %v1629_v61, %v1625_v54  ;;  %v581_v10 = vpop.permute.xlu1 %580 }
 0x364   :  { %430 = vst.msk [vmem:[#allocation14] sm:$0xff] %vm315_vm2, %v427_v62  ;;  %v432_v1 = vpack.c.bf16 %v427_v62, %v427_v62 }
 0x365   :  { %v1631_v2 = vpop.eup %1630 }
 0x366   :  { %v429_v4 = vmul.f32 %v1631_v2, %v1627_v56  ;;  %1493 = vmatmul.mubr.msk.bf16.vlgmr.msra.gmra.mrb[8].mxu1 %vm315_vm2, %v432_v1 }
 0x367   :  { %1503 = vmatpush3.bf16.xpose.msra.mxu1 %v537_v3  ;;  %1504 = vmatprep.mubr.msk.bf16.mxu1 %vm1859_vm0, %v1858_v0 }
 0x368   :  { %431 = vst.msk [vmem:[#allocation14 + $0x20] sm:$0xff] %vm315_vm2, %v429_v4  ;;  %v433_v5 = vpack.c.bf16 %v429_v4, %v429_v4  ;;  %1514 = vmatprep.subr.bf16.mxu1 %v1858_v0 }
 0x36a   :  { %1499 = vmatmul.mubr.msk.bf16.vlgmr.msra.gmra.mrb[12].mxu0 %vm315_vm2, %v433_v5 }
 0x36b   :  { %1509 = vmatpush3.bf16.xpose.msra.mxu0 %v589_v6  ;;  %1510 = vmatprep.mubr.msk.bf16.mxu0 %vm1859_vm0, %v1858_v0 }
 0x36c   :  { %1520 = vmatprep.subr.bf16.mxu0 %v1858_v0 }
 0x36e   :  { %1505 = vmatmul.mubr.msk.bf16.vlgmr.msra.gmra.mrb[12].mxu1 %vm315_vm2, %v529_v8 }
 0x36f   :  { %1516 = vmatprep.mubr.msk.bf16.mxu1 %vm1859_vm0, %v1858_v0 }
 0x372   :  { %1511 = vmatmul.mubr.msk.bf16.vlgmr.msra.gmra.mrb[16].mxu0 %vm315_vm2, %v581_v10 }
 0x373   :  { %1522 = vmatprep.mubr.msk.bf16.mxu0 %vm1859_vm0, %v1858_v0 }
 0x439   :  { %v2128_v11 = vpop.f32.mrb[8].mxu1 }
 0x43a   :  { %v1494_v12 = vpop.f32.mrb[9].mxu1 }
 0x43b   :  { %v478_v13 = vpop.f32.mrb[10].mxu1 }
 0x43c   :  { %v1495_v14 = vpop.f32.mrb[11].mxu1 }
 0x43d   :  { %v2130_v15 = vpop.f32.mrb[12].mxu0 }
 0x43e   :  { %v1500_v16 = vpop.f32.mrb[13].mxu0 }
 0x43f   :  { %v524_v18 = vpop.f32.mrb[14].mxu0 }
 0x440   :  { %v1501_v19 = vpop.f32.mrb[15].mxu0 }
 0x441   :  { %v573_v20 = vpop.f32.mrb[12].mxu1 }
 0x442   :  { %v1506_v22 = vpop.f32.mrb[13].mxu1  ;;  %v631_v23 = vsel %vm315_vm2, %v573_v20, -inf }
 0x443   :  { %632 = vmax.xlane.f32.xlu0 %v631_v23  ;;  %v576_v24 = vpop.f32.mrb[14].mxu1 }
 0x444   :  { %v1507_v25 = vpop.f32.mrb[15].mxu1 }
 0x445   :  { %v625_v26 = vpop.f32.mrb[16].mxu0 }
 0x446   :  { %v1512_v27 = vpop.f32.mrb[17].mxu0  ;;  %v634_v30 = vsel %vm315_vm2, %v625_v26, -inf }
 0x447   :  { %635 = vmax.xlane.f32.xlu1 %v634_v30  ;;  %v628_v31 = vpop.f32.mrb[18].mxu0 }
 0x448   :  { %v1513_v33 = vpop.f32.mrb[19].mxu0 }
 0x458   :  { %708 = vrot.lane.b32.xlu1 %v2092_v34, %s1860_s5 }
 0x45c   :  { %758 = vrot.lane.b32.xlu1 %v2066_v17, %s1861_s13 }
 0x460   :  { %808 = vrot.lane.b32.xlu1 %v2068_v21, %s1861_s13 }
 0x464   :  { %806 = vrot.lane.b32.xlu1 %v2080_v29, %s1861_s13 }
 0x4d0   :  { %v633_v35 = vpop.xlane.xlu0 %632 }
 0x4d1   :  { %v637_v36 = vsub.f32 %v573_v20, %v633_v35 }
 0x4d3   :  { %v639_v37 = vmul.f32 1.442695, %v637_v36 }
 0x4d4   :  { %v636_v38 = vpop.xlane.xlu1 %635 }
 0x4d5   :  { %1632 = vpow2.f32 %v639_v37  ;;  %v638_v39 = vsub.f32 %v625_v26, %v636_v38 }
 0x4d7   :  { %v641_v40 = vmul.f32 1.442695, %v638_v39 }
 0x4d8   :  { %v709_v41 = vpop.permute.xlu1 %708 }
 0x4d9   :  { %1634 = vpow2.f32 %v641_v40  ;;  %v714_v42 = vsel %vm437_vm3, %v709_v41, 0 }
 0x4da   :  { %1521 = vmatpush3.bf16.msra.mxu0 %v714_v42 }
 0x4db   :  { %1532 = vmatprep.subr.bf16.mxu0 %v1858_v0 }
 0x4dc   :  { %v759_v52 = vpop.permute.xlu1 %758 }
 0x4dd   :  { %v764_v58 = vsel %vm315_vm2, %v759_v52, 0 }
 0x4df   :  { %v1633_v43 = vpop.eup %1632 }
 0x4e0   :  { %v643_v44 = vsel %vm315_vm2, %v1633_v43, 0.0  ;;  %v809_v57 = vpop.permute.xlu1 %808 }
 0x4e1   :  { %644 = vadd.xlane.f32.xlu0 %v643_v44  ;;  %v814_v60 = vsel %vm315_vm2, %v809_v57, 0 }
 0x4e3   :  { %v1635_v45 = vpop.eup %1634 }
 0x4e4   :  { %v646_v46 = vsel %vm315_vm2, %v1635_v45, 0.0  ;;  %v807_v62 = vpop.permute.xlu1 %806 }
 0x4e5   :  { %647 = vadd.xlane.f32.xlu0 %v646_v46 }
 0x4fb   :  { %659 = vrot.lane.b32.xlu0 %v2090_v32, %s1860_s5 }
 0x4ff   :  { %756 = vrot.lane.b32.xlu0 %v2077_v28, %s1861_s13 }
 0x56e   :  { %v645_v47 = vpop.xlane.xlu0 %644 }
 0x56f   :  { %1636 = vrcp.f32 %v645_v47 }
 0x572   :  { %v648_v48 = vpop.xlane.xlu0 %647 }
 0x573   :  { %1638 = vrcp.f32 %v648_v48 }
 0x576   :  { %v660_v49 = vpop.permute.xlu0 %659 }
 0x577   :  { %v665_v50 = vsel %vm437_vm3, %v660_v49, 0 }
 0x578   :  { %1515 = vmatpush3.bf16.msra.mxu1 %v665_v50 }
 0x579   :  { %v1637_v51 = vpop.eup %1636  ;;  %1526 = vmatprep.subr.bf16.mxu1 %v1858_v0 }
 0x57a   :  { %v650_v53 = vmul.f32 %v1637_v51, %v1633_v43  ;;  %v757_v61 = vpop.permute.xlu0 %756 }
 0x57c   :  { %654 = vst.msk [vmem:[#allocation14 + $0x8] sm:$0xff] %vm315_vm2, %v650_v53  ;;  %v656_v54 = vpack.c.bf16 %v650_v53, %v650_v53 }
 0x57d   :  { %v1639_v55 = vpop.eup %1638 }
 0x57e   :  { %v652_v56 = vmul.f32 %v1639_v55, %v1635_v45  ;;  %1517 = vmatmul.mubr.msk.bf16.vlgmr.msra.gmra.mrb[16].mxu1 %vm315_vm2, %v656_v54 }
 0x57f   :  { %1528 = vmatprep.mubr.msk.bf16.mxu1 %vm1859_vm0, %v1858_v0 }
 0x580   :  { %655 = vst.msk [vmem:[#allocation14 + $0x28] sm:$0xff] %vm315_vm2, %v652_v56  ;;  %v657_v59 = vpack.c.bf16 %v652_v56, %v652_v56 }
 0x581   :  { %1527 = vmatpush3.bf16.xpose.msra.mxu1 %v764_v58 }
 0x582   :  { %1523 = vmatmul.mubr.msk.bf16.vlgmr.msra.gmra.mrb[20].mxu0 %vm315_vm2, %v657_v59  ;;  %1538 = vmatprep.subr.bf16.mxu1 %v1858_v0 }
 0x583   :  { %1533 = vmatpush3.bf16.xpose.msra.mxu0 %v814_v60  ;;  %1534 = vmatprep.mubr.msk.bf16.mxu0 %vm1859_vm0, %v1858_v0 }
 0x584   :  { %1544 = vmatprep.subr.bf16.mxu0 %v1858_v0 }
 0x588   :  { %1529 = vmatmul.mubr.msk.bf16.vlgmr.msra.gmra.mrb[20].mxu1 %vm315_vm2, %v757_v61 }
 0x589   :  { %1540 = vmatprep.mubr.msk.bf16.mxu1 %vm1859_vm0, %v1858_v0 }
 0x58a   :  { %1535 = vmatmul.mubr.msk.bf16.vlgmr.msra.gmra.mrb[24].mxu0 %vm315_vm2, %v807_v62 }
 0x58b   :  { %1546 = vmatprep.mubr.msk.bf16.mxu0 %vm1859_vm0, %v1858_v0 }
 0x651   :  { %v2170_v63 = vpop.f32.mrb[16].mxu1 }
 0x652   :  { %v1518_v1 = vpop.f32.mrb[17].mxu1 }
 0x653   :  { %v704_v2 = vpop.f32.mrb[18].mxu1 }
 0x654   :  { %v1519_v3 = vpop.f32.mrb[19].mxu1 }
 0x655   :  { %v2172_v4 = vpop.f32.mrb[20].mxu0 }
 0x656   :  { %v1601_v5 = vpack.i.bf16 %v2172_v4, %v2170_v63  ;;  %v1524_v6 = vpop.f32.mrb[21].mxu0 }
 0x657   :  { %v753_v8 = vpop.f32.mrb[22].mxu0 }
 0x658   :  { %v1525_v10 = vpop.f32.mrb[23].mxu0 }
 0x65b   :  { %v800_v12 = vpop.f32.mrb[20].mxu1 }
 0x65c   :  { %v1530_v13 = vpop.f32.mrb[21].mxu1  ;;  %v856_v14 = vsel %vm315_vm2, %v800_v12, -inf }
 0x65d   :  { %857 = vmax.xlane.f32.xlu0 %v856_v14  ;;  %v803_v16 = vpop.f32.mrb[22].mxu1  ;;  %v850_v18 = vpop.f32.mrb[24].mxu0 }
 0x65e   :  { %v1531_v19 = vpop.f32.mrb[23].mxu1  ;;  %v1536_v20 = vpop.f32.mrb[25].mxu0  ;;  %v859_v22 = vsel %vm315_vm2, %v850_v18, -inf }
 0x65f   :  { %860 = vmax.xlane.f32.xlu1 %v859_v22  ;;  %v853_v23 = vpop.f32.mrb[26].mxu0 }
 0x660   :  { %v1537_v24 = vpop.f32.mrb[27].mxu0 }
 0x670   :  { %931 = vrot.lane.b32.xlu1 %v2092_v34, %s1861_s13 }
 0x674   :  { %981 = vrot.lane.b32.xlu1 %v2066_v17, %s1862_s3 }
 0x678   :  { %1031 = vrot.lane.b32.xlu1 %v2068_v21, %s1862_s3 }
 0x67c   :  { %1029 = vrot.lane.b32.xlu1 %v2080_v29, %s1862_s3 }
 0x6ea   :  { %v858_v25 = vpop.xlane.xlu0 %857 }
 0x6eb   :  { %v862_v26 = vsub.f32 %v800_v12, %v858_v25 }
 0x6ec   :  { %v861_v27 = vpop.xlane.xlu1 %860 }
 0x6ed   :  { %v864_v30 = vmul.f32 1.442695, %v862_v26  ;;  %v863_v31 = vsub.f32 %v850_v18, %v861_v27 }
 0x6ef   :  { %1640 = vpow2.f32 %v864_v30  ;;  %v866_v33 = vmul.f32 1.442695, %v863_v31 }
 0x6f0   :  { %v932_v35 = vpop.permute.xlu1 %931 }
 0x6f1   :  { %1642 = vpow2.f32 %v866_v33  ;;  %v937_v36 = vsel %vm437_vm3, %v932_v35, 0 }
 0x6f2   :  { %1545 = vmatpush3.bf16.msra.mxu0 %v937_v36 }
 0x6f3   :  { %1556 = vmatprep.subr.bf16.mxu0 %v1858_v0 }
 0x6f4   :  { %v982_v43 = vpop.permute.xlu1 %981 }
 0x6f5   :  { %v987_v48 = vsel %vm315_vm2, %v982_v43, 0 }
 0x6f9   :  { %v1641_v17 = vpop.eup %1640 }
 0x6fa   :  { %v868_v21 = vsel %vm315_vm2, %v1641_v17, 0.0 }
 0x6fb   :  { %v1643_v37 = vpop.eup %1642  ;;  %869 = vadd.xlane.f32.xlu0 %v868_v21 }
 0x6fc   :  { %v871_v29 = vsel %vm315_vm2, %v1643_v37, 0.0 }
 0x6ff   :  { %872 = vadd.xlane.f32.xlu0 %v871_v29  ;;  %v1623_v29 = vld [vmem:[#allocation11 + $0x8] sm:$0xff]  }
 0x715   :  { %883 = vrot.lane.b32.xlu0 %v2090_v32, %s1861_s13 }
 0x719   :  { %979 = vrot.lane.b32.xlu0 %v2077_v28, %s1862_s3  ;;  %v1032_v28 = vpop.permute.xlu1 %1031 }
 0x71a   :  { %v1037_v50 = vsel %vm315_vm2, %v1032_v28, 0 }
 0x71d   :  { %v1030_v52 = vpop.permute.xlu1 %1029 }
 0x788   :  { %v870_v38 = vpop.xlane.xlu0 %869 }
 0x789   :  { %1644 = vrcp.f32 %v870_v38 }
 0x78c   :  { %v873_v39 = vpop.xlane.xlu0 %872 }
 0x78d   :  { %1646 = vrcp.f32 %v873_v39 }
 0x790   :  { %v884_v40 = vpop.permute.xlu0 %883 }
 0x791   :  { %v889_v41 = vsel %vm437_vm3, %v884_v40, 0 }
 0x792   :  { %1539 = vmatpush3.bf16.msra.mxu1 %v889_v41 }
 0x793   :  { %v1645_v42 = vpop.eup %1644  ;;  %1550 = vmatprep.subr.bf16.mxu1 %v1858_v0 }
 0x794   :  { %v875_v44 = vmul.f32 %v1645_v42, %v1641_v17  ;;  %v980_v51 = vpop.permute.xlu0 %979 }
 0x796   :  { %879 = vst.msk [vmem:[#allocation14 + $0x10] sm:$0xff] %vm315_vm2, %v875_v44  ;;  %v881_v45 = vpack.c.bf16 %v875_v44, %v875_v44 }
 0x797   :  { %v1647_v46 = vpop.eup %1646 }
 0x798   :  { %v877_v47 = vmul.f32 %v1647_v46, %v1643_v37  ;;  %1541 = vmatmul.mubr.msk.bf16.vlgmr.msra.gmra.mrb[24].mxu1 %vm315_vm2, %v881_v45  ;;  %v1622_v37 = vld [vmem:[#allocation11] sm:$0xff]  }
 0x799   :  { %1552 = vmatprep.mubr.msk.bf16.mxu1 %vm1859_vm0, %v1858_v0 }
 0x79a   :  { %880 = vst.msk [vmem:[#allocation14 + $0x30] sm:$0xff] %vm315_vm2, %v877_v47  ;;  %v882_v49 = vpack.c.bf16 %v877_v47, %v877_v47 }
 0x79b   :  { %1551 = vmatpush3.bf16.xpose.msra.mxu1 %v987_v48 }
 0x79c   :  { %1547 = vmatmul.mubr.msk.bf16.vlgmr.msra.gmra.mrb[28].mxu0 %vm315_vm2, %v882_v49  ;;  %1562 = vmatprep.subr.bf16.mxu1 %v1858_v0 }
 0x79d   :  { %1557 = vmatpush3.bf16.xpose.msra.mxu0 %v1037_v50  ;;  %1558 = vmatprep.mubr.msk.bf16.mxu0 %vm1859_vm0, %v1858_v0 }
 0x79e   :  { %1568 = vmatprep.subr.bf16.mxu0 %v1858_v0 }
 0x7a2   :  { %1553 = vmatmul.mubr.msk.bf16.vlgmr.msra.gmra.mrb[28].mxu1 %vm315_vm2, %v980_v51 }
 0x7a3   :  { %1564 = vmatprep.mubr.msk.bf16.mxu1 %vm1859_vm0, %v1858_v0 }
 0x7a4   :  { %1559 = vmatmul.mubr.msk.bf16.vlgmr.msra.gmra.mrb[32].mxu0 %vm315_vm2, %v1030_v52 }
 0x7a5   :  { %1570 = vmatprep.mubr.msk.bf16.mxu0 %vm1859_vm0, %v1858_v0 }
 0x86b   :  { %v925_v53 = vpop.f32.mrb[24].mxu1 }
 0x86c   :  { %v1542_v54 = vpop.f32.mrb[25].mxu1 }
 0x86d   :  { %v928_v55 = vpop.f32.mrb[26].mxu1 }
 0x86e   :  { %v1543_v56 = vpop.f32.mrb[27].mxu1 }
 0x86f   :  { %v973_v57 = vpop.f32.mrb[28].mxu0 }
 0x870   :  { %v1606_v58 = vpack.i.bf16 %v973_v57, %v925_v53  ;;  %v1548_v59 = vpop.f32.mrb[29].mxu0 }
 0x871   :  { %v976_v60 = vpop.f32.mrb[30].mxu0 }
 0x872   :  { %v1549_v61 = vpop.f32.mrb[31].mxu0 }
 0x875   :  { %v1023_v62 = vpop.f32.mrb[28].mxu1 }
 0x876   :  { %v1554_v1 = vpop.f32.mrb[29].mxu1  ;;  %v1079_v2 = vsel %vm315_vm2, %v1023_v62, -inf }
 0x877   :  { %1080 = vmax.xlane.f32.xlu0 %v1079_v2  ;;  %v1026_v3 = vpop.f32.mrb[30].mxu1  ;;  %v1073_v6 = vpop.f32.mrb[32].mxu0 }
 0x878   :  { %v1555_v8 = vpop.f32.mrb[31].mxu1  ;;  %v1560_v10 = vpop.f32.mrb[33].mxu0  ;;  %v1082_v12 = vsel %vm315_vm2, %v1073_v6, -inf }
 0x879   :  { %1083 = vmax.xlane.f32.xlu1 %v1082_v12  ;;  %v1076_v13 = vpop.f32.mrb[34].mxu0 }
 0x87a   :  { %v1561_v14 = vpop.f32.mrb[35].mxu0 }
 0x88a   :  { %1154 = vrot.lane.b32.xlu1 %v2092_v34, %s1862_s3 }
 0x88e   :  { %1602 = vrot.lane.b32.xlu1 %v1601_v5, %s1851_s26 }
 0x892   :  { %1607 = vrot.lane.b32.xlu1 %v1606_v58, %s1863_s16 }
 0x904   :  { %v1081_v16 = vpop.xlane.xlu0 %1080 }
 0x905   :  { %v1085_v18 = vsub.f32 %v1023_v62, %v1081_v16 }
 0x906   :  { %v1084_v19 = vpop.xlane.xlu1 %1083 }
 0x907   :  { %v1087_v20 = vmul.f32 1.442695, %v1085_v18  ;;  %v1086_v22 = vsub.f32 %v1073_v6, %v1084_v19 }
 0x909   :  { %1648 = vpow2.f32 %v1087_v20  ;;  %v1089_v23 = vmul.f32 1.442695, %v1086_v22 }
 0x90a   :  { %v1155_v24 = vpop.permute.xlu1 %1154 }
 0x90b   :  { %1650 = vpow2.f32 %v1089_v23  ;;  %v1160_v25 = vsel %vm437_vm3, %v1155_v24, 0 }
 0x90c   :  { %1569 = vmatpush3.bf16.msra.mxu0 %v1160_v25 }
 0x90e   :  { %v1603_v47 = vpop.permute.xlu1 %1602 }
 0x90f   :  { %v1605_v48 = vunpack.i.h.bf16 %v1603_v47  ;;  %v1604_v49 = vunpack.i.l.bf16 %v1603_v47 }
 0x911   :  { %v1227_v52 = vsel %vm315_vm2, %v2130_v15, %v1605_v48  ;;  %v1226_v53 = vsel %vm315_vm2, %v2128_v11, %v1604_v49 }
 0x912   :  { %v1608_v28 = vpop.permute.xlu1 %1607 }
 0x913   :  { %v1649_v34 = vpop.eup %1648  ;;  %v1610_v50 = vunpack.i.h.bf16 %v1608_v28  ;;  %v1609_v51 = vunpack.i.l.bf16 %v1608_v28 }
 0x914   :  { %v1091_v26 = vsel %vm315_vm2, %v1649_v34, 0.0 }
 0x915   :  { %v1651_v27 = vpop.eup %1650  ;;  %1092 = vadd.xlane.f32.xlu0 %v1091_v26  ;;  %v1229_v56 = vsel %vm1228_vm4, %v1226_v53, %v1609_v51  ;;  %v1230_v57 = vsel %vm1228_vm4, %v1227_v52, %v1610_v50 }
 0x916   :  { %v1094_v63 = vsel %vm315_vm2, %v1651_v27, 0.0 }
 0x919   :  { %1095 = vadd.xlane.f32.xlu0 %v1094_v63 }
 0x92f   :  { %1106 = vrot.lane.b32.xlu0 %v2090_v32, %s1862_s3 }
 0x9a2   :  { %v1093_v4 = vpop.xlane.xlu0 %1092 }
 0x9a3   :  { %1652 = vrcp.f32 %v1093_v4 }
 0x9a6   :  { %v1096_v5 = vpop.xlane.xlu0 %1095 }
 0x9a7   :  { %1654 = vrcp.f32 %v1096_v5 }
 0x9aa   :  { %v1107_v30 = vpop.permute.xlu0 %1106 }
 0x9ab   :  { %v1112_v31 = vsel %vm437_vm3, %v1107_v30, 0 }
 0x9ac   :  { %1563 = vmatpush3.bf16.msra.mxu1 %v1112_v31 }
 0x9ad   :  { %v1653_v33 = vpop.eup %1652  ;;  %1574 = vmatprep.subr.bf16.mxu1 %v1858_v0 }
 0x9ae   :  { %v1098_v35 = vmul.f32 %v1653_v33, %v1649_v34 }
 0x9b0   :  { %1102 = vst.msk [vmem:[#allocation14 + $0x18] sm:$0xff] %vm315_vm2, %v1098_v35  ;;  %v1104_v36 = vpack.c.bf16 %v1098_v35, %v1098_v35 }
 0x9b1   :  { %v1655_v17 = vpop.eup %1654 }
 0x9b2   :  { %v1100_v21 = vmul.f32 %v1655_v17, %v1651_v27  ;;  %1565 = vmatmul.mubr.msk.bf16.vlgmr.msra.gmra.mrb[32].mxu1 %vm315_vm2, %v1104_v36 }
 0x9b3   :  { %1578 = vmatprep.mubr.msk.bf16.mxu1 %vm1859_vm0, %v1858_v0  ;;  %1575 = vmatpush3.bf16.msra.mxu1 %v1622_v37 }
 0x9b4   :  { %1103 = vst.msk [vmem:[#allocation14 + $0x38] sm:$0xff] %vm315_vm2, %v1100_v21  ;;  %v1105_v32 = vpack.c.bf16 %v1100_v21, %v1100_v21  ;;  %1576 = vmatprep.subr.bf16.mxu1 %v1858_v0 }
 0x9b6   :  { %1571 = vmatmul.mubr.msk.bf16.vlgmr.msra.gmra.mrb[36].mxu0 %vm315_vm2, %v1105_v32 }
 0x9b7   :  { %1577 = vmatpush3.bf16.msra.mxu1 %v1623_v29 }
 0xa85   :  { %v1148_v38 = vpop.f32.mrb[32].mxu1 }
 0xa86   :  { %v1566_v39 = vpop.f32.mrb[33].mxu1 }
 0xa87   :  { %v1151_v40 = vpop.f32.mrb[34].mxu1 }
 0xa88   :  { %v1567_v41 = vpop.f32.mrb[35].mxu1 }
 0xa89   :  { %v1196_v42 = vpop.f32.mrb[36].mxu0 }
 0xa8a   :  { %v1611_v43 = vpack.i.bf16 %v1196_v42, %v1148_v38  ;;  %v1572_v44 = vpop.f32.mrb[37].mxu0 }
 0xa8b   :  { %v1199_v45 = vpop.f32.mrb[38].mxu0 }
 0xa8c   :  { %1612 = vrot.lane.b32.xlu0 %v1611_v43, %s1864_s15  ;;  %v1573_v46 = vpop.f32.mrb[39].mxu0 }
 0xafe   :  { %v1613_v0 = vpop.permute.xlu0 %1612 }
 0xaff   :  { %v1615_v54 = vunpack.i.h.bf16 %v1613_v0  ;;  %v1614_v55 = vunpack.i.l.bf16 %v1613_v0 }
 0xb01   :  { %v1233_v58 = vsel %vm1231_vm5, %v1230_v57, %v1615_v54  ;;  %v1232_v59 = vsel %vm1231_vm5, %v1229_v56, %v1614_v55 }
 0xb02   :  { %v1234_v60 = vpack.c.bf16 %v1233_v58, %v1232_v59 }
 0xb04   :  { %1579 = vmatmul.mubr.msk.bf16.vlgmr.msra.gmra.mrb[36].mxu1 %vm144_vm1, %v1234_v60 }
 0xbd7   :  { %v1288_v61 = vpop.f32.mrb[36].mxu1 }
 0xbd8   :  { %v1295_v62 = vadd.f32 %v1288_v61, %v2040_v7  ;;  %v1580_v1 = vpop.f32.mrb[37].mxu1 }
 0xbd9   :  { %v1291_v2 = vpop.f32.mrb[38].mxu1 }
 0xbda   :  { %v1296_v3 = vadd.f32 %v1291_v2, %v2043_v9  ;;  %v1581_v15 = vpop.f32.mrb[39].mxu1  ;;  %v1297_v6 = vsel %vm144_vm1, %v1295_v62, 0.0 }
 0xbdb   :  { %1298 = vadd.xlane.f32.xlu1 %v1297_v6 }
 0xbdc   :  { %v1300_v11 = vsel %vm144_vm1, %v1296_v3, 0.0 }
 0xbdd   :  { %1301 = vadd.xlane.f32.xlu0 %v1300_v11 }
 0xc68   :  { %v1299_v8 = vpop.xlane.xlu1 %1298 }
 0xc69   :  { %v1304_v10 = vmul.f32 0.03125, %v1299_v8 }
 0xc6a   :  { %v1302_v12 = vpop.xlane.xlu0 %1301 }
 0xc6b   :  { %v1306_v13 = vsub.f32 %v1295_v62, %v1304_v10  ;;  %v1305_v14 = vmul.f32 0.03125, %v1302_v12 }
 0xc6d   :  { %v1307_v16 = vsub.f32 %v1296_v3, %v1305_v14  ;;  %v1308_v18 = vmul.f32 %v1306_v13, %v1306_v13 }
 0xc6f   :  { %v1310_v7 = vsel %vm144_vm1, %v1308_v18, 0.0  ;;  %v1309_v19 = vmul.f32 %v1307_v16, %v1307_v16 }
 0xc70   :  { %1311 = vadd.xlane.f32.xlu0 %v1310_v7 }
 0xc71   :  { %v1313_v9 = vsel %vm144_vm1, %v1309_v19, 0.0 }
 0xc74   :  { %1314 = vadd.xlane.f32.xlu0 %v1313_v9 }
 0xc75   :  { %1803 = shalt.err (!%p1800_p10)
}
 0xc76   :  { %s1804_s20 = scalar_lea.hbm %s2295_s10, 1024 }
 0xc77   :  { %p1805_p11 = scmp.ne.s32.totalorder %s2295_s10, %s1804_s20  ;;  %p1808_p12 = scmp.lt.u32.totalorder %s1804_s20, %s2295_s10 }
 0xc79   :  { %p1810_p13 = pnand %p1808_p12, %p1805_p11 }
 0xc7b   :  { %1813 = shalt.err (!%p1810_p13)
}
 0xc7c   :  { %1367 = dma.vmem_to_hbm [thread:$0]  %s1362_s18, 1024, %s2295_s10, [#allocation15], %s1850_s25, %s1850_s25, %s1851_s26  }
 0xc7d   :  { %v1408_v27 = vld [vmem:[%s2292_s7] ss:$0 sm:$0xff]  ;;  %s1866_s10 = smov [#allocation13]  }
 0xc7e   :  { %v1409_v4 = vld [vmem:[%s2293_s8] ss:$0 sm:$0xff]  ;;  %s1349_s6 = sshll.u32 %s1866_s10, 4  ;;  %s1350_s6 = int_to_ptr.vmem [resolvable:$true] %s1349_s6 }
 0xc7f   :  { %s1814_s1 = scalar_lea.vmem %s1350_s6, 256  ;;  %p1819_p1 = scmp.lt.s32.totalorder %s1350_s6, %s1350_s6 }
 0xc80   :  { %p1815_p0 = scmp.ne.s32.totalorder %s1350_s6, %s1814_s1  ;;  %p1820_p2 = scmp.lt.s32.totalorder %s1814_s1, %s1814_s1 }
 0xc82   :  { %p1821_p3 = por %p1820_p2, %p1819_p1 }
 0xc84   :  { %p1822_p4 = pnand %p1821_p3, %p1815_p0 }
 0xcfd   :  { %v1312_v20 = vpop.xlane.xlu0 %1311 }
 0xcfe   :  { %v1316_v22 = vmul.f32 0.03125, %v1312_v20 }
 0xd00   :  { %v1318_v23 = vadd.f32 1e-05, %v1316_v22 }
 0xd01   :  { %v1315_v24 = vpop.xlane.xlu0 %1314 }
 0xd02   :  { %1656 = vrsqrt.f32 %v1318_v23  ;;  %v1317_v25 = vmul.f32 0.03125, %v1315_v24 }
 0xd04   :  { %v1319_v34 = vadd.f32 1e-05, %v1317_v25 }
 0xd06   :  { %1658 = vrsqrt.f32 %v1319_v34 }
 0xd0c   :  { %v1657_v26 = vpop.eup %1656 }
 0xd0d   :  { %v1322_v63 = vmul.f32 %v1657_v26, %v1306_v13 }
 0xd0f   :  { %v1331_v5 = vmul.f32 %v1408_v27, %v1322_v63 }
 0xd10   :  { %v1659_v30 = vpop.eup %1658 }
 0xd11   :  { %v1323_v31 = vmul.f32 %v1659_v30, %v1307_v16  ;;  %v1340_v33 = vadd.f32 %v1409_v4, %v1331_v5 }
 0xd13   :  { %v1332_v35 = vmul.f32 %v1408_v27, %v1323_v31  ;;  %1342 = vst.msk [vmem:[#allocation13] sm:$0xff] %vm144_vm1, %v1340_v33 }
 0xd15   :  { %v1341_v36 = vadd.f32 %v1409_v4, %v1332_v35 }
 0xd17   :  { %1343 = vst.msk [vmem:[#allocation13 + $0x8] sm:$0xff] %vm144_vm1, %v1341_v36 }
 0xd18   :  { %1825 = shalt.err (!%p1822_p4)
}
 0xd19   :  { %s1826_s14 = scalar_lea.hbm %s2294_s9, 256 }
 0xd1a   :  { %p1827_p5 = scmp.ne.s32.totalorder %s2294_s9, %s1826_s14  ;;  %p1830_p6 = scmp.lt.u32.totalorder %s1826_s14, %s2294_s9 }
 0xd1c   :  { %p1832_p7 = pnand %p1830_p6, %p1827_p5 }
 0xd1e   :  { %1835 = shalt.err (!%p1832_p7)
}
 0xd1f   :  { %1355 = dma.vmem_to_hbm [thread:$0]  %s1350_s6, 256, %s2294_s9, [#allocation4], %s1850_s25, %s1850_s25, %s1851_s26  }
 0xd20   :  { %1844 = dma.done.wait [#allocation4], 256  }
 0xd21   :  { %1845 = vsyncadd [#allocation4], 4294967040 }
 0xd22   :  { %1846 = dma.done.wait [#allocation15], 1024  }
 0xd23   :  { %1847 = vsyncadd [#allocation15], 4294966272 }
 0xd24   :  { %1374 = vsyncpa [#allocation3], 1 }
 0xd25   :  { %1375 = vsyncpa [#allocation6], 1 }
 0xd26   :  { %1376 = vsyncpa [#allocation9], 1 }
 0xd27   :  { %1377 = vsyncpa [#allocation12], 1 }
 0xd28   :  { %1378 = vsyncpa [#allocation4], 1 }
 0xd29   :  { %1379 = vsyncpa [#allocation15], 1 }

</bundles_post_ra>
